<compile_context>
chip_gen: v7x
topology: tpu7x:2x2x1
jax: 0.10.0
libtpu: 0.0.40
codegen_flags: <defaults>
</compile_context>

<pallas_src>
import jax
import jax.numpy as jnp
from jax import lax
from jax.experimental import pallas as pl
from jax.experimental.pallas import tpu as pltpu


def _round_up(x, m):
    return ((x + m - 1) // m) * m


# ---------------------------------------------------------------------------
# Kernel
# ---------------------------------------------------------------------------
def supcon_kernel(x_ref, wc_ref, bc_ref, w2_ref, b2_ref, o_ref, acc_ref):
    """Grid = (B-tiles ["parallel"], K-tiles ["arbitrary", reduction over d_in]).

    x_ref:   [TB, TK]  bf16   input K-chunk of this B tile
    wc_ref:  [TK, Ep]  bf16   (We @ W1) K-chunk, zero-padded to Ep lanes
    bc_ref:  [1,  Ep]  f32    (be @ W1 + b1), zero-padded
    w2_ref:  [Ep, Fp]  bf16   zero rows/cols for the padded parts
    b2_ref:  [1,  Fp]  f32
    o_ref:   [TB, Fp]  f32
    acc_ref: [TB, Ep]  f32    K-reduction accumulator (VMEM scratch)
    """
    k = pl.program_id(1)

    @pl.when(k == 0)
    def _init():
        acc_ref[...] = jnp.zeros_like(acc_ref)

    # Folded (encoder + head-L1) matmul, K-accumulated on the MXU in f32.
    acc_ref[...] += jnp.dot(x_ref[...], wc_ref[...],
                            preferred_element_type=jnp.float32)

    @pl.when(k == pl.num_programs(1) - 1)
    def _finalize():
        h = jnp.maximum(acc_ref[...] + bc_ref[...], 0.0)          # bias + ReLU (f32 VPU)
        z = jnp.dot(h.astype(jnp.bfloat16), w2_ref[...],
                    preferred_element_type=jnp.float32) + b2_ref[...]
        # F.normalize(z, p=2, dim=1, eps=1e-12) == z * rsqrt(max(sum(z^2), eps^2))
        s = jnp.sum(z * z, axis=1, keepdims=True)
        inv = lax.rsqrt(jnp.maximum(s, 1e-24))                    # EUP rsqrt
        o_ref[...] = (z * inv).astype(o_ref.dtype)


# ---------------------------------------------------------------------------
# Tiling / resource helpers
# ---------------------------------------------------------------------------
def _pick_batch_tile(B, requested=None):
    """>=128 rows when the batch allows (256 preferred for the 256-wide MXU on
    v6e/v7x), always a multiple of 16 for bf16 sublane packing, and >=2 tiles
    when possible so the 'parallel' B axis shards across v7x's 2 TensorCores."""
    Bp16 = _round_up(max(B, 1), 16)
    bt = min(256 if requested is None else requested, Bp16)
    bt = _round_up(bt, 16)
    if requested is None and Bp16 // bt < 2 and Bp16 >= 256:
        bt = _round_up(pl.cdiv(Bp16, 2), 16)
    return bt


def _pick_k_tile(d_in, requested=512):
    kt = min(_round_up(requested, 128), _round_up(d_in, 128))
    return max(kt, 128)


def _vmem_limit_bytes():
    """Generation-aware VMEM limit with headroom (~48 MiB on v7x, ~96 MiB v5e/v6e)."""
    try:
        cap = int(pltpu.get_tpu_info().vmem_capacity_bytes)
    except Exception:
        cap = 64 << 20                      # conservative fallback = v7x per-core VMEM
    return max(32 << 20, min(cap * 3 // 4, 112 << 20))


def _const_spec(shape, index_map):
    """BlockSpec for operands resident across the whole grid (constant index_map).
    Single-buffered when pl.Buffered is available; default double-buffering otherwise."""
    try:
        return pl.BlockSpec(shape, index_map, pipeline_mode=pl.Buffered(1))
    except Exception:
        return pl.BlockSpec(shape, index_map)


# ---------------------------------------------------------------------------
# One-time (batch-independent) parameter preparation — hoisted out of forward
# ---------------------------------------------------------------------------
def prepare_supcon_params(params, *, k_tile=512):
    """Fold the linear stand-in encoder into the head's first Linear, zero-pad to
    lane-/K-dense shapes, cast weights to bf16.  Call once; reuse across forwards."""
    we, be, w1, b1, w2, b2 = params
    d_in, E = we.shape
    feat_dim = w2.shape[1]

    # Fold the (linear) stand-in encoder into head L1 (exact: affine o affine).
    # TODO(synk): a real nonlinear conv/BN backbone cannot be folded like this; it
    # would need its own kernel(s) producing `feat` that feeds this head kernel.
    wc = jnp.dot(we, w1, preferred_element_type=jnp.float32)            # [d_in, E]
    bc = jnp.dot(be, w1, preferred_element_type=jnp.float32) + b1       # [1,  E]

    # Pad encoding / feature dims to lane-dense multiples of 128 (exact with zeros:
    # zero bias cols, ReLU(0)=0, zero W2 rows/cols contribute nothing).
    Ep = max(128, _round_up(E, 128))
    Fp = max(128, _round_up(feat_dim, 128))
    kt = _pick_k_tile(d_in, k_tile)
    d_in_p = _round_up(d_in, kt)

    wc = jnp.pad(wc, ((0, d_in_p - d_in), (0, Ep - E)))
    bc = jnp.pad(bc, ((0, 0), (0, Ep - E)))
    w2p = jnp.pad(w2, ((0, Ep - E), (0, Fp - feat_dim)))
    b2p = jnp.pad(b2, ((0, 0), (0, Fp - feat_dim)))

    return dict(
        wc=wc.astype(jnp.bfloat16), bc=bc.astype(jnp.float32),
        w2=w2p.astype(jnp.bfloat16), b2=b2p.astype(jnp.float32),
        d_in=d_in, d_in_p=d_in_p, k_tile=kt,
        E=E, Ep=Ep, feat_dim=feat_dim, Fp=Fp,
    )


# ---------------------------------------------------------------------------
# Forward
# ---------------------------------------------------------------------------
def supcon_forward(x_nchw, prepared, *, batch_tile=None, out_dtype=jnp.float32):
    B = x_nchw.shape[0]
    d_in, d_in_p, kt = prepared["d_in"], prepared["d_in_p"], prepared["k_tile"]
    Ep, Fp, feat_dim = prepared["Ep"], prepared["Fp"], prepared["feat_dim"]

    x_flat = x_nchw.reshape(B, -1)
    assert x_flat.shape[1] == d_in, "input C*H*W does not match prepared params"

    bt = _pick_batch_tile(B, batch_tile)
    Bp = _round_up(B, bt)
    n_btiles = Bp // bt
    n_ktiles = d_in_p // kt

    # bf16 input halves the dominant x/Wc DMA bytes; zero-pad batch & K (exact).
    x_flat = jnp.pad(x_flat.astype(jnp.bfloat16),
                     ((0, Bp - B), (0, d_in_p - d_in)))

    cost = pl.CostEstimate(
        flops=2 * Bp * d_in_p * Ep + 2 * Bp * Ep * Fp,
        transcendentals=Bp,
        bytes_accessed=(Bp * d_in_p * 2                 # x (bf16)
                        + n_btiles * d_in_p * Ep * 2    # Wc re-read per B tile (bf16)
                        + Ep * Fp * 2 + (Ep + Fp) * 4   # W2 + biases
                        + Bp * Fp * 4),                 # output (f32)
    )

    out = pl.pallas_call(
        supcon_kernel,
        out_shape=jax.ShapeDtypeStruct((Bp, Fp), out_dtype),
        grid=(n_btiles, n_ktiles),
        in_specs=[
            pl.BlockSpec((bt, kt), lambda i, k: (i, k)),      # x   (pipelined over B, K)
            pl.BlockSpec((kt, Ep), lambda i, k: (k, 0)),      # W_c (pipelined over K)
            _const_spec((1, Ep), lambda i, k: (0, 0)),        # b_c (resident, 1-buffered)
            _const_spec((Ep, Fp), lambda i, k: (0, 0)),       # W2  (resident, 1-buffered)
            _const_spec((1, Fp), lambda i, k: (0, 0)),        # b2  (resident, 1-buffered)
        ],
        out_specs=pl.BlockSpec((bt, Fp), lambda i, k: (i, 0)),
        scratch_shapes=[pltpu.VMEM((bt, Ep), jnp.float32)],   # K-reduction accumulator
        compiler_params=pltpu.CompilerParams(
            dimension_semantics=("parallel", "arbitrary"),
            vmem_limit_bytes=_vmem_limit_bytes(),
        ),
        cost_estimate=cost,
    )(x_flat, prepared["wc"], prepared["bc"], prepared["w2"], prepared["b2"])

    return out[:B, :feat_dim]


# ---------------------------------------------------------------------------
# Synthetic parameters (shapes mirror the PyTorch module)
# ---------------------------------------------------------------------------
def init_params(key, d_in, encoding_size, feat_dim):
    k0, k1, k2 = jax.random.split(key, 3)
    # stand-in encoder: Linear(d_in, encoding_size)
    we = jax.random.normal(k0, (d_in, encoding_size), jnp.float32) / jnp.sqrt(d_in)
    be = jnp.zeros((1, encoding_size), jnp.float32)
    # head: Linear(encoding_size, encoding_size)
    w1 = jax.random.normal(k1, (encoding_size, encoding_size), jnp.float32) / jnp.sqrt(
        encoding_size)
    b1 = jnp.zeros((1, encoding_size), jnp.float32)
    # head: Linear(encoding_size, feat_dim)
    w2 = jax.random.normal(k2, (encoding_size, feat_dim), jnp.float32) / jnp.sqrt(
        encoding_size)
    b2 = jnp.zeros((1, feat_dim), jnp.float32)
    return we, be, w1, b1, w2, b2


if __name__ == "__main__":
    # Small shapes consistent with the module: NCHW image batch.
    B, C, H, W = 2, 4, 16, 16
    encoding_size = 32
    feat_dim = 128

    key = jax.random.PRNGKey(0)
    kx, kp = jax.random.split(key)
    x = jax.random.normal(kx, (B, C, H, W), jnp.float32)
    params = init_params(kp, C * H * W, encoding_size, feat_dim)

    prepared = prepare_supcon_params(params)     # one-time fold / pad / bf16 cast
    out = supcon_forward(x, prepared)
    out = jax.block_until_ready(out)

    # ---- checks: shape, finiteness, unit row norms, and f32 reference ----
    we, be, w1, b1, w2, b2 = params
    xf = x.reshape(B, -1)
    feat = xf @ we + be
    h = jnp.maximum(feat @ w1 + b1, 0.0)
    z = h @ w2 + b2
    ref = z / jnp.maximum(jnp.linalg.norm(z, axis=1, keepdims=True), 1e-12)

    row_norms = jnp.sqrt(jnp.sum(out * out, axis=1))
    assert out.shape == (B, feat_dim)
    assert bool(jnp.all(jnp.isfinite(out)))
    assert bool(jnp.all(jnp.abs(row_norms - 1.0) < 1e-4))
    # bf16 weights/activations vs f32 reference -> loose tolerance
    assert bool(jnp.max(jnp.abs(out - ref)) < 3e-2)

    print("KERNEL_OK")
</pallas_src>

<mosaic_0001>
module attributes {stable_mosaic.version = 11 : i64} {
  func.func @supcon_kernel(%arg0: i32, %arg1: i32, %arg2: memref<16x512xbf16, #tpu.memory_space<vmem>>, %arg3: memref<512x128xbf16, #tpu.memory_space<vmem>>, %arg4: memref<1x128xf32, #tpu.memory_space<vmem>>, %arg5: memref<128x128xbf16, #tpu.memory_space<vmem>>, %arg6: memref<1x128xf32, #tpu.memory_space<vmem>>, %arg7: memref<16x128xf32, #tpu.memory_space<vmem>>, %arg8: memref<16x128xf32, #tpu.memory_space<vmem>>) attributes {dimension_semantics = [#tpu.dimension_semantics<parallel>, #tpu.dimension_semantics<arbitrary>], iteration_bounds = array<i64: 1, 2>, scalar_prefetch = 0 : i64, scratch_operands = 1 : i64, tpu.core_type = #tpu.core_type<tc>, window_params = [{transform_indices = @transform_0, window_bounds = array<i64: 16, 512>}, {transform_indices = @transform_1, window_bounds = array<i64: 512, 128>}, {pipeline_mode = #tpu.pipeline_mode<synchronous>, transform_indices = @transform_2, window_bounds = array<i64: 1, 128>}, {pipeline_mode = #tpu.pipeline_mode<synchronous>, transform_indices = @transform_3, window_bounds = array<i64: 128, 128>}, {pipeline_mode = #tpu.pipeline_mode<synchronous>, transform_indices = @transform_4, window_bounds = array<i64: 1, 128>}, {transform_indices = @transform_5, window_bounds = array<i64: 16, 128>}]} {
    %c0_i32 = arith.constant 0 : i32
    %0 = arith.cmpi eq, %arg1, %c0_i32 : i32
    %1 = arith.extui %0 : i1 to i32
    %c0_i32_0 = arith.constant 0 : i32
    %2 = arith.cmpi ne, %1, %c0_i32_0 : i32
    scf.if %2 {
      %cst_9 = arith.constant 0.000000e+00 : f32
      %12 = vector.broadcast %cst_9 : f32 to vector<16x128xf32>
      %c0_10 = arith.constant 0 : index
      %c0_11 = arith.constant 0 : index
      %13 = vector.load %arg8[%c0_10, %c0_11] : memref<16x128xf32, #tpu.memory_space<vmem>>, vector<16x128xf32>
      tpu.vector_store %arg8[%c0_10, %c0_11], %12 {strides = array<i32>} : memref<16x128xf32, #tpu.memory_space<vmem>>, vector<16x128xf32>,
    } else {
    }
    %c0 = arith.constant 0 : index
    %c0_1 = arith.constant 0 : index
    %3 = vector.load %arg8[%c0, %c0_1] : memref<16x128xf32, #tpu.memory_space<vmem>>, vector<16x128xf32>
    %c0_2 = arith.constant 0 : index
    %c0_3 = arith.constant 0 : index
    %4 = vector.load %arg2[%c0_2, %c0_3] : memref<16x512xbf16, #tpu.memory_space<vmem>>, vector<16x512xbf16>
    %c0_4 = arith.constant 0 : index
    %c0_5 = arith.constant 0 : index
    %5 = vector.load %arg3[%c0_4, %c0_5] : memref<512x128xbf16, #tpu.memory_space<vmem>>, vector<512x128xbf16>
    %cst = arith.constant dense<0.000000e+00> : vector<16x128xf32>
    %6 = tpu.matmul %4, %5, %cst {dimension_numbers = #tpu.dot_dimension_numbers<[1], [0], [0], [1], [0, 0, 1, 1], [], []>} : vector<16x512xbf16>, vector<512x128xbf16>, vector<16x128xf32> -> vector<16x128xf32>
    %7 = arith.addf %3, %6 : vector<16x128xf32>
    %c0_6 = arith.constant 0 : index
    %c0_7 = arith.constant 0 : index
    %8 = vector.load %arg8[%c0_6, %c0_7] : memref<16x128xf32, #tpu.memory_space<vmem>>, vector<16x128xf32>
    tpu.vector_store %arg8[%c0_6, %c0_7], %7 {strides = array<i32>} : memref<16x128xf32, #tpu.memory_space<vmem>>, vector<16x128xf32>,
    %c1_i32 = arith.constant 1 : i32
    %9 = arith.cmpi eq, %arg1, %c1_i32 : i32
    %10 = arith.extui %9 : i1 to i32
    %c0_i32_8 = arith.constant 0 : i32
    %11 = arith.cmpi ne, %10, %c0_i32_8 : i32
    scf.if %11 {
      %c0_9 = arith.constant 0 : index
      %c0_10 = arith.constant 0 : index
      %12 = vector.load %arg8[%c0_9, %c0_10] : memref<16x128xf32, #tpu.memory_space<vmem>>, vector<16x128xf32>
      %c0_11 = arith.constant 0 : index
      %c0_12 = arith.constant 0 : index
      %13 = vector.load %arg4[%c0_11, %c0_12] : memref<1x128xf32, #tpu.memory_space<vmem>>, vector<1x128xf32>
      %14 = vector.broadcast %13 : vector<1x128xf32> to vector<16x128xf32>
      %15 = arith.addf %12, %14 : vector<16x128xf32>
      %cst_13 = arith.constant 0.000000e+00 : f32
      %16 = vector.broadcast %cst_13 : f32 to vector<16x128xf32>
      %17 = arith.maximumf %15, %16 : vector<16x128xf32>
      %18 = arith.truncf %17 : vector<16x128xf32> to vector<16x128xbf16>
      %c0_14 = arith.constant 0 : index
      %c0_15 = arith.constant 0 : index
      %19 = vector.load %arg5[%c0_14, %c0_15] : memref<128x128xbf16, #tpu.memory_space<vmem>>, vector<128x128xbf16>
      %cst_16 = arith.constant dense<0.000000e+00> : vector<16x128xf32>
      %20 = tpu.matmul %18, %19, %cst_16 {dimension_numbers = #tpu.dot_dimension_numbers<[1], [0], [0], [1], [0, 0, 1, 1], [], []>} : vector<16x128xbf16>, vector<128x128xbf16>, vector<16x128xf32> -> vector<16x128xf32>
      %c0_17 = arith.constant 0 : index
      %c0_18 = arith.constant 0 : index
      %21 = vector.load %arg6[%c0_17, %c0_18] : memref<1x128xf32, #tpu.memory_space<vmem>>, vector<1x128xf32>
      %22 = vector.broadcast %21 : vector<1x128xf32> to vector<16x128xf32>
      %23 = arith.addf %20, %22 : vector<16x128xf32>
      %24 = arith.mulf %23, %23 : vector<16x128xf32>
      %cst_19 = arith.constant dense<0.000000e+00> : vector<16xf32>
      %25 = vector.multi_reduction <add>, %24, %cst_19 [1] : vector<16x128xf32> to vector<16xf32>
      %26 = vector.shape_cast %25 : vector<16xf32> to vector<16x1xf32>
      %cst_20 = arith.constant 1.000000e-24 : f32
      %27 = vector.broadcast %cst_20 : f32 to vector<16x1xf32>
      %28 = arith.maximumf %26, %27 : vector<16x1xf32>
      %29 = math.rsqrt %28 : vector<16x1xf32>
      %30 = vector.broadcast %29 : vector<16x1xf32> to vector<16x128xf32>
      %31 = arith.mulf %23, %30 : vector<16x128xf32>
      %c0_21 = arith.constant 0 : index
      %c0_22 = arith.constant 0 : index
      %32 = vector.load %arg7[%c0_21, %c0_22] : memref<16x128xf32, #tpu.memory_space<vmem>>, vector<16x128xf32>
      tpu.vector_store %arg7[%c0_21, %c0_22], %31 {strides = array<i32>} : memref<16x128xf32, #tpu.memory_space<vmem>>, vector<16x128xf32>,
    } else {
    }
    return
  }
  func.func @transform_0(%arg0: i32, %arg1: i32) -> (i32, i32) {
    %c0_i32 = arith.constant 0 : i32
    return %arg0, %arg1 : i32, i32
  }
  func.func @transform_1(%arg0: i32, %arg1: i32) -> (i32, i32) {
    %c0_i32 = arith.constant 0 : i32
    %c0_i32_0 = arith.constant 0 : i32
    return %arg1, %c0_i32 : i32, i32
  }
  func.func @transform_2(%arg0: i32, %arg1: i32) -> (i32, i32) {
    %c0_i32 = arith.constant 0 : i32
    %c0_i32_0 = arith.constant 0 : i32
    %c0_i32_1 = arith.constant 0 : i32
    return %c0_i32, %c0_i32_0 : i32, i32
  }
  func.func @transform_3(%arg0: i32, %arg1: i32) -> (i32, i32) {
    %c0_i32 = arith.constant 0 : i32
    %c0_i32_0 = arith.constant 0 : i32
    %c0_i32_1 = arith.constant 0 : i32
    return %c0_i32, %c0_i32_0 : i32, i32
  }
  func.func @transform_4(%arg0: i32, %arg1: i32) -> (i32, i32) {
    %c0_i32 = arith.constant 0 : i32
    %c0_i32_0 = arith.constant 0 : i32
    %c0_i32_1 = arith.constant 0 : i32
    return %c0_i32, %c0_i32_0 : i32, i32
  }
  func.func @transform_5(%arg0: i32, %arg1: i32) -> (i32, i32) {
    %c0_i32 = arith.constant 0 : i32
    %c0_i32_0 = arith.constant 0 : i32
    return %arg0, %c0_i32 : i32, i32
  }
}

</mosaic_0001>

<bundles_post_ra>
// kernel: tpu_custom_call.1
= control target key start
LH: loop header
LB: loop body
LE: loop exit
PB: predicated region body
PF: predicated region fallthrough
CT: control target
= control target key end

     0   :  { %s1716_s0 = inlined_call_operand.hbm [shape: bf16[16,1024], index: 0, kind: input, shape index: {}]   ;;  %s1717_s1 = inlined_call_operand.hbm [shape: bf16[1024,128], index: 1, kind: input, shape index: {}]   ;;  %s1718_s2 = inlined_call_operand.vmem [shape: f32[1,128], index: 2, kind: input, shape index: {}]   ;;  %s1719_s3 = inlined_call_operand.hbm [shape: bf16[128,128], index: 3, kind: input, shape index: {}]   ;;  %s1720_s4 = inlined_call_operand.vmem [shape: f32[1,128], index: 4, kind: input, shape index: {}]   ;;  %s1721_s5 = inlined_call_operand.hbm [shape: f32[16,128], index: 5, kind: output, shape index: {}]  }
   0x1   :  { %1729 = sst [smem:[#allocation15_spill]] %s1716_s0 }
   0x2   :  { %1730 = sst [smem:[#allocation16_spill]] %s1719_s3 }
   0x3   :  { %10 = vsyncpa [#allocation4], 0 }
   0x4   :  { %12 = vsyncpa [#allocation4 + $0x1], 0 }
   0x5   :  { %13 = vsyncpa [#allocation7], 0 }
   0x6   :  { %15 = vsyncpa [#allocation7 + $0x1], 0 }
   0x7   :  { %16 = vsyncpa [#allocation5], 0  ;;  %s1439_s18 = smov 0   ;;  %s1441_s19 = smov 0  }
   0x8   :  { %s1443_s20 = smov 0   ;;  %s1445_s21 = smov 0  }
   0x9   :  { %s1447_s22 = smov 0   ;;  %s1449_s23 = smov 0  }
   0xa LB: > { %s1468_s24 = sadd.s32 4294967295, %s1393_s23   ;;  %s43_s25 = sadd.s32 1, %s1381_s20  ;;  %s1393_s23 = sphi %s1449_s23, %s22_s23   ;;  %s1389_s22 = sphi %s1447_s22, %s1751_s22   ;;  %s1385_s21 = sphi %s1445_s21, %s1750_s21   ;;  %s1381_s20 = sphi %s1443_s20, %s1749_s20   ;;  %s1377_s19 = sphi %s1441_s19, %s1748_s19   ;;  %s1373_s18 = sphi %s1439_s18, %s1747_s18  }
   0xb   : > { %p50_p0 = scmp.ne.s32.totalorder %s1381_s20, %s1377_s19  ;;  %p51_p1 = scmp.eq.s32.totalorder %s1393_s23, 0 }
   0xc   : > { %p56_p2 = scmp.ne.s32.totalorder %s1377_s19, %s1373_s18  ;;  %p1722_p3 = scmp.eq.s32.totalorder %s1468_s24, 0 }
   0xd   : > { %p52_p4 = por %p51_p1, %p50_p0  ;;  %p939_p5 = scmp.ge.s32.totalorder %s1393_s23, 1 }
   0xe   : > { %p1479_p6 = por %p1722_p3, %p56_p2  ;;  %p182_p7 = scmp.lt.s32.totalorder %s1393_s23, 3 }
   0xf   : > { %s1395_s28 = smov [#allocation8]   ;;  %p1103_p10 = scmp.lt.s32.totalorder %s1393_s23, 2 }
  0x10   : > { %s1731_s26 = scalar_select %p1479_p6, 1, 0 }
  0x11   : > { %p1484_p8 = pnand %p939_p5, %p182_p7  ;;  %s197_s29 = sshll.u32 %s1395_s28, 4  ;;  %s198_s29 = int_to_ptr.vmem [resolvable:$true] %s197_s29 }
  0x12   : > { %p1497_p12 = pnand %p1103_p10, %p52_p4  ;;  %s31_s7 = sadd.s32 1, %s1389_s22 }
  0x13   : > { %s1732_s27 = scalar_select %p1484_p8, 1, 0 }
  0x14   : > { %p1091_p9 = pneg %p1484_p8  ;;  %s1735_s3 = sld [smem:[#allocation16_spill]] }
  0x15   : > { %s1734_s6 = scalar_select %p1497_p12, 1, 0 }
  0x16   : > { %p1493_p11 = pnand %p1091_p9, %p1722_p3 }
  0x18   : > { %p1219_p0 = pneg %p1493_p11 }
  0x1a   : > { %s1217_s10 = scalar_lea.hbm %s1735_s3, 1024 }
  0x1b   : > { %p1218_p13 = scmp.ne.s32.totalorder %s1735_s3, %s1217_s10  ;;  %p1224_p4 = scmp.lt.u32.totalorder %s1217_s10, %s1735_s3 }
  0x1d   : > { %p1220_p1 = pnand %p1219_p0, %p1218_p13 }
  0x1f   : > { %p1221_p2 = pneg %p1220_p1 }
  0x21   : > { %p1226_p5 = pnand %p1224_p4, %p1221_p2 }
  0x23   : > { %1229 = shalt.err (!%p1226_p5)
}
  0x24   : > { %s1230_s15 = scalar_lea.vmem %s198_s29, 1024  ;;  %p1238_p3 = scmp.lt.s32.totalorder %s198_s29, %s198_s29 }
  0x25   : > { %p1231_p7 = scmp.ne.s32.totalorder %s198_s29, %s1230_s15  ;;  %p1239_p6 = scmp.lt.s32.totalorder %s1230_s15, %s1230_s15 }
  0x27   : > { %p1233_p9 = pnand %p1231_p7, %p1219_p0  ;;  %p1240_p8 = por %p1239_p6, %p1238_p3 }
  0x29   : > { %p1234_p10 = pneg %p1233_p9 }
  0x2b   : > { %p1241_p12 = pnand %p1240_p8, %p1234_p10 }
  0x2d   : > { %1244 = shalt.err (!%p1241_p12)
}
  0x2e   : > { %s1726_s16 = smov 64   ;;  %s1727_s17 = smov 4  }
  0x2f   : > { %1094 = dma.hbm_to_vmem [thread:$0]  (!%p1493_p11), %s1735_s3, 1024, %s198_s29, [#allocation7], %s1726_s16, %s1726_s16, %s1727_s17  }
  0x30   : > { %p32_p3 = scmp.ge.s32.totalorder %s31_s7, 2  ;;  %s1522_s8 = sand.u32 1, %s1381_s20  }
  0x31   : > { %s1004_s9 = sshll.u32 %s1389_s22, 8  ;;  %s942_s10 = sshll.u32 %s1522_s8, 5 }
  0x32   : > { %s1753_s7 = smov (%p32_p3, %s31_s7), 0  ;;  %s1737_s0 = sld [smem:[#allocation15_spill]] }
  0x33   : > { %1736 = sst [smem:[#allocation14_spill]] %s1753_s7  ;;  %s39_s30 = ssub.s32 %s1389_s22, %s1753_s7 }
  0x34   : > { %p41_p6 = scmp.eq.s32.totalorder %s39_s30, 0  ;;  %s218_s29 = scalar_lea.vmem [#allocation3], %s942_s10 }
  0x35   : > { %s228_s14 = sshll.u32 %s218_s29, 4  ;;  %s215_s28 = scalar_lea.sflag [#allocation4], %s1522_s8  ;;  %s1540_s14 = int_to_ptr.vmem [resolvable:$true] %s228_s14 }
  0x36   : > { %s1538_s15 = scalar_select %p41_p6, %s1381_s20, %s43_s25  }
  0x37   : > { %p1738_p11 = scmp.ne.s32.totalorder %s1734_s6, 0 }
  0x38   : > { %s1533_s13 = scalar_lea.hbm %s1737_s0, %s1004_s9  ;;  %s1250_s10 = scalar_lea.hbm %s1737_s0, 1024 }
  0x39   : > { %s1245_s16 = scalar_lea.hbm %s1533_s13, 512  ;;  %p1247_p12 = pneg %p1738_p11 }
  0x3a   : > { %p1246_p8 = scmp.ne.s32.totalorder %s1533_s13, %s1245_s16  ;;  %p1251_p1 = scmp.lt.u32.totalorder %s1533_s13, %s1737_s0 }
  0x3b   : > { %p1252_p2 = scmp.lt.u32.totalorder %s1250_s10, %s1245_s16  ;;  %p1254_p5 = scmp.lt.u32.totalorder %s1245_s16, %s1533_s13 }
  0x3c   : > { %p1248_p13 = pnand %p1247_p12, %p1246_p8 }
  0x3d   : > { %p1253_p4 = por %p1252_p2, %p1251_p1 }
  0x3e   : > { %p1249_p0 = pneg %p1248_p13 }
  0x3f   : > { %p1255_p7 = por %p1254_p5, %p1253_p4 }
  0x41   : > { %p1256_p9 = pnand %p1255_p7, %p1249_p0 }
  0x43   : > { %1259 = shalt.err (!%p1256_p9)
}
  0x44   : > { %s1260_s25 = scalar_lea.vmem %s1540_s14, 512  ;;  %s1398_s29 = smov [#allocation3]  }
  0x45   : > { %p1261_p10 = scmp.ne.s32.totalorder %s1540_s14, %s1260_s25  ;;  %s1265_s9 = sshll.u32 %s1398_s29, 4  ;;  %s1266_s9 = int_to_ptr.vmem [resolvable:$false] %s1265_s9 }
  0x46   : > { %s1267_s30 = scalar_lea.vmem %s1266_s9, 1024  ;;  %p1268_p8 = scmp.lt.s32.totalorder %s1540_s14, %s1266_s9 }
  0x47   : > { %p1263_p3 = pnand %p1261_p10, %p1247_p12  ;;  %p1269_p13 = scmp.lt.s32.totalorder %s1267_s30, %s1260_s25 }
  0x49   : > { %p1264_p6 = pneg %p1263_p3  ;;  %p1270_p1 = por %p1269_p13, %p1268_p8 }
  0x4b   : > { %p1271_p2 = pnand %p1270_p1, %p1264_p6 }
  0x4d   : > { %1274 = shalt.err (!%p1271_p2)
}
  0x4e   : > { %s1399_s16 = smov 512   ;;  %s1400_s10 = smov 256  }
  0x4f   : > { %s1401_s11 = smov 16   ;;  %s945_s12 = sshll.u32 %s1522_s8, 8 }
  0x50   : > { %1098 = dma.hbm_to_vmem [thread:$0]  (!%p1738_p11), %s1533_s13, 512, %s1540_s14, %s215_s28, %s1399_s16, %s1400_s10, %s1401_s11  }
  0x51   : > { %s1005_s29 = sshll.u32 %s1389_s22, 12  ;;  %s242_s17 = scalar_lea.vmem [#allocation6], %s945_s12 }
  0x52   : > { %s1576_s30 = scalar_lea.hbm %s1717_s1, %s1005_s29  ;;  %s249_s18 = sshll.u32 %s242_s17, 4  ;;  %s1578_s18 = int_to_ptr.vmem [resolvable:$true] %s249_s18 }
  0x53   : > { %s1739_s0 = sand.u32 1, %s1393_s23   ;;  %s1275_s7 = scalar_lea.hbm %s1576_s30, 4096 }
  0x54   : > { %s1582_s3 = scalar_lea.sflag [#allocation7], %s1739_s0  ;;  %p1276_p0 = scmp.ne.s32.totalorder %s1576_s30, %s1275_s7 }
  0x55   : > { %s1280_s14 = scalar_lea.hbm %s1717_s1, 8192  ;;  %p1281_p7 = scmp.lt.u32.totalorder %s1576_s30, %s1717_s1 }
  0x56   : > { %p1278_p4 = pnand %p1276_p0, %p1247_p12  ;;  %p1282_p9 = scmp.lt.u32.totalorder %s1280_s14, %s1275_s7 }
  0x57   : > { %p1284_p3 = scmp.lt.u32.totalorder %s1275_s7, %s1576_s30 }
  0x58   : > { %p1279_p5 = pneg %p1278_p4  ;;  %p1283_p10 = por %p1282_p9, %p1281_p7 }
  0x5a   : > { %p1285_p6 = por %p1284_p3, %p1283_p10 }
  0x5c   : > { %p1286_p8 = pnand %p1285_p6, %p1279_p5 }
  0x5e   : > { %1289 = shalt.err (!%p1286_p8)
}
  0x5f   : > { %s1290_s0 = scalar_lea.vmem %s1578_s18, 4096  ;;  %s1402_s17 = smov [#allocation6]  }
  0x60   : > { %p1291_p13 = scmp.ne.s32.totalorder %s1578_s18, %s1290_s0  ;;  %s1295_s10 = sshll.u32 %s1402_s17, 4  ;;  %s1296_s10 = int_to_ptr.vmem [resolvable:$false] %s1295_s10 }
  0x61   : > { %s1297_s11 = scalar_lea.vmem %s1296_s10, 8192  ;;  %p1298_p0 = scmp.lt.s32.totalorder %s1578_s18, %s1296_s10 }
  0x62   : > { %p1293_p1 = pnand %p1291_p13, %p1247_p12  ;;  %p1299_p4 = scmp.lt.s32.totalorder %s1297_s11, %s1290_s0 }
  0x64   : > { %p1294_p2 = pneg %p1293_p1  ;;  %p1300_p7 = por %p1299_p4, %p1298_p0 }
  0x66   : > { %p1301_p9 = pnand %p1300_p7, %p1294_p2 }
  0x68   : > { %1304 = shalt.err (!%p1301_p9)
}
  0x69   : > { %s1740_s7 = smov 4   ;;  %s1741_s12 = smov 64  }
  0x6a   : > { %1101 = dma.hbm_to_vmem [thread:$0]  (!%p1738_p11), %s1576_s30, 4096, %s1578_s18, %s1582_s3, %s1741_s12, %s1741_s12, %s1740_s7  }
  0x6b   : > { %p1742_p12 = scmp.ne.s32.totalorder %s1732_s27, 0 }
  0x6c   : > { %s263_s29 = sand.u32 (!%p1742_p12), 1, %s1377_s19   ;;  %p1743_p5 = scmp.ne.s32.totalorder (!%p1742_p12), %s1731_s26, 0 }
  0x6d   : > { %261 = sbr.rel (%p1742_p12) target bundleno = 806 (0x326), region = 40  ;;  %s949_s25 = sshll.u32 (!%p1742_p12), %s263_s29, 5 }
  0x6e   : > { %s264_s9 = scalar_lea.sflag (!%p1742_p12), [#allocation4], %s263_s29  ;;  %s1614_s8 = scalar_lea.vmem (!%p1742_p12), [#allocation3], %s949_s25 }
  0x74   : > { %1356 = dma.done.wait (%p1743_p5), %s264_s9, 512  }
  0x75   : > { %1358 = vsyncadd (%p1743_p5), %s264_s9, 4294966784  ;;  %s272_s6 = sand.u32 1, %s1468_s24   ;;  %s950_s13 = sshll.u32 %s263_s29, 8 }
  0x76   : > { %s273_s3 = scalar_lea.sflag [#allocation7], %s272_s6  ;;  %s1621_s18 = scalar_lea.vmem [#allocation6], %s950_s13 }
  0x77   : > { %1360 = dma.done.wait (%p1743_p5), %s273_s3, 4096  }
  0x78   : > { %1362 = vsyncadd (%p1743_p5), %s273_s3, 4294963200  ;;  %p1744_p11 = scmp.eq.s32.totalorder %s1468_s24, 0 }
  0x7a   : > { %1364 = dma.done.wait (%p1744_p11), [#allocation7], 1024   ;;  %p1745_p10 = pmov %p1744_p11 }
  0x7b   : > { %p952_p3 = scmp.ne.s32.totalorder %s1385_s21, 0 }
  0x7c   : > { %1366 = vsyncadd (%p1745_p10), [#allocation7], 4294966272  ;;  %v1403_v0 = vmov (!%p952_p3), 0.0  }
  0x7d   : > { %315 = sbr.rel (%p952_p3) target bundleno = 132 (0x84), region = 56  ;;  %316 = vst [vmem:[#allocation2] sm:$0xff] (!%p952_p3), %v1403_v0  ;;  %317 = vst [vmem:[#allocation2 + $0x8] sm:$0xff] (!%p952_p3), %v1403_v0 }
  0x84 PF: > { %v1167_v1 = vld [vmem:[%s1621_s18 + $0x40] sm:$0xff]   ;;  %v1171_v5 = vld [vmem:[%s1621_s18 + $0x48] sm:$0xff]   ;;  %v1175_v9 = vld [vmem:[%s1621_s18 + $0x50] sm:$0xff]   ;;  %p989_p6 = scmp.ne.s32.totalorder %s1385_s21, 1 }
  0x85   : > { %v1168_v2 = vld [vmem:[%s1621_s18 + $0xc0] sm:$0xff]   ;;  %1006 = vmatprep.subr.bf16.mxu0 %v1167_v1  ;;  %v1172_v6 = vld [vmem:[%s1621_s18 + $0xc8] sm:$0xff]   ;;  %v1176_v10 = vld [vmem:[%s1621_s18 + $0xd0] sm:$0xff]   ;;  %v1404_v56 = vmov (!%p989_p6), 0.0   ;;  %vm1405_vm0 = vmmov (!%p989_p6), 0  }
  0x86   : > { %v1169_v3 = vld [vmem:[%s1621_s18] sm:$0xff]   ;;  %1028 = vmatprep.subr.bf16.mxu1 %v1168_v2  ;;  %v1173_v7 = vld [vmem:[%s1621_s18 + $0x8] sm:$0xff]   ;;  %v1177_v11 = vld [vmem:[%s1621_s18 + $0x10] sm:$0xff]  }
  0x87   : > { %v1170_v4 = vld [vmem:[%s1621_s18 + $0x80] sm:$0xff]   ;;  %1007 = vmatpush3.bf16.msra.mxu0 %v1169_v3  ;;  %v1174_v8 = vld [vmem:[%s1621_s18 + $0x88] sm:$0xff]   ;;  %v1178_v12 = vld [vmem:[%s1621_s18 + $0x90] sm:$0xff]  }
  0x88   : > { %1029 = vmatpush3.bf16.msra.mxu1 %v1170_v4  ;;  %1008 = vmatprep.subr.bf16.mxu0 %v1171_v5  ;;  %v1179_v13 = vld [vmem:[%s1621_s18 + $0x58] sm:$0xff]   ;;  %v1183_v17 = vld [vmem:[%s1621_s18 + $0x60] sm:$0xff]   ;;  %v1187_v21 = vld [vmem:[%s1621_s18 + $0x68] sm:$0xff]  }
  0x89   : > { %1030 = vmatprep.subr.bf16.mxu1 %v1172_v6  ;;  %v1180_v14 = vld [vmem:[%s1621_s18 + $0xd8] sm:$0xff]   ;;  %v1184_v18 = vld [vmem:[%s1621_s18 + $0xe0] sm:$0xff]   ;;  %v1188_v22 = vld [vmem:[%s1621_s18 + $0xe8] sm:$0xff]  }
  0x8a   : > { %v1181_v15 = vld [vmem:[%s1621_s18 + $0x18] sm:$0xff]   ;;  %v1185_v19 = vld [vmem:[%s1621_s18 + $0x20] sm:$0xff]   ;;  %v1189_v23 = vld [vmem:[%s1621_s18 + $0x28] sm:$0xff]  }
  0x8b   : > { %1009 = vmatpush3.bf16.msra.mxu0 %v1173_v7  ;;  %v1182_v16 = vld [vmem:[%s1621_s18 + $0x98] sm:$0xff]   ;;  %v1186_v20 = vld [vmem:[%s1621_s18 + $0xa0] sm:$0xff]   ;;  %v1190_v24 = vld [vmem:[%s1621_s18 + $0xa8] sm:$0xff]  }
  0x8c   : > { %1031 = vmatpush3.bf16.msra.mxu1 %v1174_v8  ;;  %1010 = vmatprep.subr.bf16.mxu0 %v1175_v9  ;;  %v1191_v25 = vld [vmem:[%s1621_s18 + $0x70] sm:$0xff]   ;;  %v1195_v29 = vld [vmem:[%s1621_s18 + $0x78] sm:$0xff]   ;;  %v1205_v55 = vld [vmem:[#allocation8] sm:$0xff] (!%p989_p6)  }
  0x8d   : > { %1032 = vmatprep.subr.bf16.mxu1 %v1176_v10  ;;  %v1192_v26 = vld [vmem:[%s1621_s18 + $0xf0] sm:$0xff]   ;;  %v1196_v30 = vld [vmem:[%s1621_s18 + $0xf8] sm:$0xff]   ;;  %v1206_v57 = vld [vmem:[#allocation8 + $0x8] sm:$0xff] (!%p989_p6)  }
  0x8e   : > { %v1193_v27 = vld [vmem:[%s1621_s18 + $0x30] sm:$0xff]   ;;  %v1197_v31 = vld [vmem:[%s1621_s18 + $0x38] sm:$0xff]   ;;  %v1209_v60 = vld [vmem:[#allocation8 + $0x20] sm:$0xff] (!%p989_p6)  }
  0x8f   : > { %1011 = vmatpush3.bf16.msra.mxu0 %v1177_v11  ;;  %v1194_v28 = vld [vmem:[%s1621_s18 + $0xb0] sm:$0xff]   ;;  %v1198_v32 = vld [vmem:[%s1621_s18 + $0xb8] sm:$0xff]   ;;  %v1210_v61 = vld [vmem:[#allocation8 + $0x28] sm:$0xff] (!%p989_p6)  }
  0x90   : > { %1033 = vmatpush3.bf16.msra.mxu1 %v1178_v12  ;;  %1012 = vmatprep.subr.bf16.mxu0 %v1179_v13  ;;  %v1199_v33 = vld [vmem:[%s1614_s8] ss:$16 sps:$4 sm:$0xff]   ;;  %v1201_v34 = vld [vmem:[%s1614_s8 + $0x4] ss:$16 sps:$4 sm:$0xff]   ;;  %v1202_v35 = vld [vmem:[%s1614_s8 + $0x8] ss:$16 sps:$4 sm:$0xff]  }
  0x91   : > { %1034 = vmatprep.subr.bf16.mxu1 %v1180_v14  ;;  %v1204_v36 = vld [vmem:[%s1614_s8 + $0xc] ss:$16 sps:$4 sm:$0xff]   ;;  %632 = vmatprep.mubr.bf16.mxu0 %v1201_v34  ;;  %v318_v46 = vld [vmem:[#allocation2] sm:$0xff] }
  0x92   : > { %673 = vmatprep.mubr.bf16.mxu1 %v1204_v36  ;;  %v319_v51 = vld [vmem:[#allocation2 + $0x8] sm:$0xff]  ;;  %v1207_v58 = vld [vmem:[#allocation8 + $0x10] sm:$0xff] (!%p989_p6)  }
  0x93   : > { %1013 = vmatpush3.bf16.msra.mxu0 %v1181_v15  ;;  %v1208_v59 = vld [vmem:[#allocation8 + $0x18] sm:$0xff] (!%p989_p6)   ;;  %v990_v0 = vld [vmem:[%s1718_s2] ss:$0 sm:$0xff] (!%p989_p6) }
  0x94   : > { %1035 = vmatpush3.bf16.msra.mxu1 %v1182_v16  ;;  %1014 = vmatprep.subr.bf16.mxu0 %v1183_v17  ;;  %v1211_v3 = vld [vmem:[#allocation8 + $0x30] sm:$0xff] (!%p989_p6)   ;;  %v1212_v6 = vld [vmem:[#allocation8 + $0x38] sm:$0xff] (!%p989_p6)  }
  0x95   : > { %1036 = vmatprep.subr.bf16.mxu1 %v1184_v18  ;;  %v991_v8 = vld [vmem:[%s1720_s4] ss:$0 sm:$0xff] (!%p989_p6) }
  0x97   : > { %1015 = vmatpush3.bf16.msra.mxu0 %v1185_v19 }
  0x98   : > { %1037 = vmatpush3.bf16.msra.mxu1 %v1186_v20  ;;  %1016 = vmatprep.subr.bf16.mxu0 %v1187_v21 }
  0x99   : > { %1038 = vmatprep.subr.bf16.mxu1 %v1188_v22 }
  0x9b   : > { %1017 = vmatpush3.bf16.msra.mxu0 %v1189_v23 }
  0x9c   : > { %1039 = vmatpush3.bf16.msra.mxu1 %v1190_v24  ;;  %1018 = vmatprep.subr.bf16.mxu0 %v1191_v25 }
  0x9d   : > { %1040 = vmatprep.subr.bf16.mxu1 %v1192_v26 }
  0x9f   : > { %1019 = vmatpush3.bf16.msra.mxu0 %v1193_v27 }
  0xa0   : > { %1041 = vmatpush3.bf16.msra.mxu1 %v1194_v28  ;;  %1020 = vmatprep.subr.bf16.mxu0 %v1195_v29 }
  0xa1   : > { %1042 = vmatprep.subr.bf16.mxu1 %v1196_v30 }
  0xa3   : > { %1021 = vmatpush3.bf16.msra.mxu0 %v1197_v31 }
  0xa4   : > { %1043 = vmatpush3.bf16.msra.mxu1 %v1198_v32  ;;  %1059 = vmatprep.subr.bf16.mxu0 (!%p989_p6), %v1404_v56 }
  0xa6   : > { %633 = vmatmul.mubr.bf16.vlgmr.msra.gmra.mrb[0].mxu0 %v1199_v33 }
  0xa7   : > { %674 = vmatmul.mubr.bf16.vlgmr.msra.gmra.mrb[0].mxu1 %v1202_v35  ;;  %1060 = vmatpush3.bf16.msra.mxu0 (!%p989_p6), %v1205_v55 }
  0xa8   : > { %1075 = vmatprep.mubr.msk.bf16.mxu0 (!%p989_p6), %vm1405_vm0, %v1404_v56  ;;  %1061 = vmatprep.subr.bf16.mxu0 (!%p989_p6), %v1404_v56 }
  0xab   : > { %1062 = vmatpush3.bf16.msra.mxu0 (!%p989_p6), %v1206_v57 }
  0xac   : > { %1063 = vmatprep.subr.bf16.mxu0 (!%p989_p6), %v1404_v56 }
  0xaf   : > { %1064 = vmatpush3.bf16.msra.mxu0 (!%p989_p6), %v1207_v58 }
  0xb0   : > { %1065 = vmatprep.subr.bf16.mxu0 (!%p989_p6), %v1404_v56 }
  0xb3   : > { %1066 = vmatpush3.bf16.msra.mxu0 (!%p989_p6), %v1208_v59 }
  0xb4   : > { %1067 = vmatprep.subr.bf16.mxu0 (!%p989_p6), %v1404_v56 }
  0xb7   : > { %1068 = vmatpush3.bf16.msra.mxu0 (!%p989_p6), %v1209_v60 }
  0xb8   : > { %1069 = vmatprep.subr.bf16.mxu0 (!%p989_p6), %v1404_v56 }
  0xbb   : > { %1070 = vmatpush3.bf16.msra.mxu0 (!%p989_p6), %v1210_v61 }
  0xbc   : > { %1071 = vmatprep.subr.bf16.mxu0 (!%p989_p6), %v1404_v56 }
  0xbf   : > { %1072 = vmatpush3.bf16.msra.mxu0 (!%p989_p6), %v1211_v3 }
  0xc0   : > { %1073 = vmatprep.subr.bf16.mxu0 (!%p989_p6), %v1404_v56 }
  0xc3   : > { %1074 = vmatpush3.bf16.msra.mxu0 (!%p989_p6), %v1212_v6 }
 0x179   : > { %v1022_v37 = vpop.f32.mrb[0].mxu0 }
 0x17a   : > { %v1044_v38 = vpop.f32.mrb[0].mxu1  ;;  %v1023_v39 = vpop.f32.mrb[1].mxu0 }
 0x17b   : > { %v1024_v40 = vadd.f32 %v1023_v39, %v1022_v37  ;;  %v1045_v41 = vpop.f32.mrb[1].mxu1  ;;  %v1025_v42 = vpop.f32.mrb[2].mxu0 }
 0x17c   : > { %v1046_v43 = vadd.f32 %v1045_v41, %v1044_v38  ;;  %v1047_v44 = vpop.f32.mrb[2].mxu1  ;;  %v1026_v45 = vpop.f32.mrb[3].mxu0 }
 0x17d   : > { %v1027_v47 = vadd.f32 %v1026_v45, %v1025_v42  ;;  %v1048_v48 = vpop.f32.mrb[3].mxu1 }
 0x17e   : > { %v676_v49 = vadd.f32 %v1046_v43, %v1024_v40  ;;  %v1049_v50 = vadd.f32 %v1048_v48, %v1047_v44  ;;  %689 = sbr.rel (%p989_p6) target bundleno = 780 (0x30c), region = 60 }
 0x180   : > { %v682_v52 = vadd.f32 %v676_v49, %v318_v46  ;;  %v679_v53 = vadd.f32 %v1049_v50, %v1027_v47 }
 0x182   : > { %684 = vst [vmem:[#allocation2] sm:$0xff] %v682_v52  ;;  %v683_v54 = vadd.f32 %v679_v53, %v319_v51 }
 0x184   : > { %685 = vst [vmem:[#allocation2 + $0x8] sm:$0xff] %v683_v54 }
 0x189   : > { %v690_v62 = vld [vmem:[#allocation2] sm:$0xff] }
 0x18a   : > { %v699_v1 = vadd.f32 %v990_v0, %v690_v62 }
 0x18b   : > { %v691_v63 = vld [vmem:[#allocation2 + $0x8] sm:$0xff] }
 0x18c   : > { %v700_v2 = vadd.f32 %v990_v0, %v691_v63  ;;  %v701_v4 = vmax.f32 %v699_v1, 0.0 }
 0x18e   : > { %v702_v5 = vmax.f32 %v700_v2, 0.0 }
 0x190   : > { %v703_v7 = vpack.c.bf16 %v702_v5, %v701_v4 }
 0x192   : > { %1076 = vmatmul.mubr.bf16.vlgmr.msra.gmra.mrb[0].mxu0 %v703_v7 }
 0x265   : > { %v809_v9 = vpop.f32.mrb[0].mxu0 }
 0x266   : > { %v810_v10 = vadd.f32 %v991_v8, %v809_v9  ;;  %v1077_v11 = vpop.f32.mrb[1].mxu0 }
 0x267   : > { %v812_v12 = vpop.f32.mrb[2].mxu0 }
 0x268   : > { %v813_v13 = vadd.f32 %v991_v8, %v812_v12  ;;  %v1078_v14 = vpop.f32.mrb[3].mxu0  ;;  %v816_v15 = vmul.f32 %v810_v10, %v810_v10 }
 0x26a   : > { %818 = vadd.xlane.f32.xlu0 %v816_v15  ;;  %v817_v16 = vmul.f32 %v813_v13, %v813_v13 }
 0x26e   : > { %820 = vadd.xlane.f32.xlu0 %v817_v16 }
 0x2f7   : > { %v819_v17 = vpop.xlane.xlu0 %818 }
 0x2f8   : > { %v822_v18 = vmax.f32 %v819_v17, 1e-24 }
 0x2fa   : > { %1213 = vrsqrt.f32 %v822_v18 }
 0x2fb   : > { %v821_v19 = vpop.xlane.xlu0 %820 }
 0x2fc   : > { %v823_v20 = vmax.f32 %v821_v19, 1e-24 }
 0x2fe   : > { %1215 = vrsqrt.f32 %v823_v20 }
 0x304   : > { %v1214_v21 = vpop.eup %1213 }
 0x305   : > { %v826_v22 = vmul.f32 %v1214_v21, %v810_v10 }
 0x307   : > { %828 = vst [vmem:[#allocation9] sm:$0xff] %v826_v22 }
 0x308   : > { %v1216_v23 = vpop.eup %1215 }
 0x309   : > { %v827_v24 = vmul.f32 %v1216_v23, %v813_v13 }
 0x30b   : > { %829 = vst [vmem:[#allocation9 + $0x8] sm:$0xff] %v827_v24 }
 0x30c PF: > { %p1105_p8 = scmp.eq.s32.totalorder %s1468_s24, 1  ;;  %s1406_s14 = smov [#allocation9]  }
 0x30d   : > { %s839_s28 = sshll.u32 %s1406_s14, 4  ;;  %s840_s28 = int_to_ptr.vmem [resolvable:$true] %s839_s28 }
 0x30e   : > { %s1305_s16 = scalar_lea.vmem %s840_s28, 256  ;;  %p1312_p0 = scmp.lt.s32.totalorder %s840_s28, %s840_s28 }
 0x30f   : > { %p1306_p13 = scmp.ne.s32.totalorder %s840_s28, %s1305_s16  ;;  %p1313_p4 = scmp.lt.s32.totalorder %s1305_s16, %s1305_s16 }
 0x311   : > { %p1307_p1 = pnand %p1306_p13, %p1105_p8  ;;  %p1314_p7 = por %p1313_p4, %p1312_p0 }
 0x313   : > { %p1308_p2 = pneg %p1307_p1 }
 0x315   : > { %p1315_p9 = pnand %p1314_p7, %p1308_p2 }
 0x317   : > { %1318 = shalt.err (!%p1315_p9)
}
 0x318   : > { %s1319_s10 = scalar_lea.hbm %s1721_s5, 256 }
 0x319   : > { %p1320_p12 = scmp.ne.s32.totalorder %s1721_s5, %s1319_s10  ;;  %p1325_p10 = scmp.lt.u32.totalorder %s1319_s10, %s1721_s5 }
 0x31b   : > { %p1321_p5 = pnand %p1320_p12, %p1105_p8 }
 0x31d   : > { %p1322_p11 = pneg %p1321_p5 }
 0x31f   : > { %p1327_p3 = pnand %p1325_p10, %p1322_p11 }
 0x321   : > { %1330 = shalt.err (!%p1327_p3)
}
 0x322   : > { %s1407_s25 = smov 128   ;;  %s1408_s9 = smov 8  }
 0x323   : > { %1088 = dma.vmem_to_hbm [thread:$0]  (%p1105_p8), %s840_s28, 256, %s1721_s5, [#allocation5], %s1407_s25, %s1407_s25, %s1408_s9  }
 0x324   : > { %1368 = dma.done.wait (%p1105_p8), [#allocation5], 256  }
 0x325   : > { %1370 = vsyncadd (%p1105_p8), [#allocation5], 4294967040 }
 0x326 PF: > { %s22_s23 = sadd.s32 1, %s1393_s23   ;;  %s1746_s13 = sld [smem:[#allocation14_spill]] }
 0x327   : > { %p19_p6 = scmp.ge.s32.totalorder %s22_s23, 4   ;;  %s1747_s18 = smov %s1377_s19 }
 0x328   : > { %s1748_s19 = smov %s1381_s20  ;;  %s1749_s20 = smov %s1538_s15 }
 0x329   : > { %s1750_s21 = smov %s1389_s22  ;;  %21 = sbr.rel (!%p19_p6) target bundleno = 10 (0xa), region = 103 }
 0x32c   : > { %s1751_s22 = smov %s1746_s13 }
 0x330   :  { %855 = vsyncpa [#allocation4], 1 }
 0x331   :  { %857 = vsyncpa [#allocation4 + $0x1], 1 }
 0x332   :  { %858 = vsyncpa [#allocation7], 1 }
 0x333   :  { %860 = vsyncpa [#allocation7 + $0x1], 1 }
 0x334   :  { %861 = vsyncpa [#allocation5], 1 }
 0x335   :  { %863 = vsyncpa [#allocation5 + $0x1], 1 }

</bundles_post_ra>
